<compile_context>
chip_gen: v7x
topology: tpu7x:2x2x1
jax: 0.10.0
libtpu: 0.0.40
codegen_flags: <defaults>
</compile_context>

<pallas_src>
import functools

import jax
import jax.numpy as jnp
from jax import lax
from jax.experimental import pallas as pl
from jax.experimental.pallas import tpu as pltpu


def _round_up(x, m):
    return ((x + m - 1) // m) * m


def _kpdesc_kernel(x_ref, w1_ref, b1_ref, w2_ref, b2_ref, out_ref, acc_ref, *,
                   inv_hw):
    """Fused avgpool (tiled) -> Linear+ReLU -> Linear+Sigmoid -> L2 normalize.

    x_ref:   (tb, ts, C)  channel-last spatial chunk (may be bf16)
    w1_ref:  (C, HID)     regressor weight (in x out layout)
    b1_ref:  (1, HID)
    w2_ref:  (HID, D)     keypoint_desc_regressor weight (in x out layout)
    b2_ref:  (1, D)
    out_ref: (tb, D)
    acc_ref: (tb, C)      f32 pooled-sum accumulator (scratch)
    """
    s = pl.program_id(1)

    # Zero the pooled-sum accumulator at the start of each batch tile.
    @pl.when(s == 0)
    def _():
        acc_ref[...] = jnp.zeros_like(acc_ref)

    # Partial sum over this spatial chunk; accumulate in f32 even for bf16 in.
    x = x_ref[...].astype(jnp.float32)                       # (tb, ts, C)
    acc_ref[...] += jnp.sum(x, axis=1)                       # (tb, C)

    # Epilogue only on the last spatial step of this batch tile.
    @pl.when(s == pl.num_programs(1) - 1)
    def _():
        # AdaptiveAvgPool2d(1) + flatten  (zero spatial padding is harmless:
        # we divide by the true H*W)
        pooled = acc_ref[...] * inv_hw                       # (tb, C)

        # regressor: Linear + ReLU   (Dropout == identity in eval mode)
        y = jnp.dot(pooled, w1_ref[...], preferred_element_type=jnp.float32)
        y = jnp.maximum(y + b1_ref[...], 0.0)                # (tb, HID)

        # keypoint_desc_regressor: Linear + Sigmoid.
        # Stable sigmoid via tanh (EUP slot, no overflow for large |z|).
        z = jnp.dot(y, w2_ref[...], preferred_element_type=jnp.float32)
        z = 0.5 * jnp.tanh(0.5 * (z + b2_ref[...])) + 0.5    # (tb, D)

        # F.normalize(dim=1, p=2, eps=1e-12):
        #   z / max(||z||, eps)  ==  z * rsqrt(max(sum(z^2), eps^2))
        ssq = jnp.sum(z * z, axis=-1, keepdims=True)
        out_ref[...] = (z * lax.rsqrt(jnp.maximum(ssq, 1e-24))).astype(out_ref.dtype)


def keypoint_descriptor_net(x_nchw, params, *, batch_tile=None,
                            spatial_tile=None, input_dtype=None):
    """x_nchw: (B, C, H, W) feature map from the (external) resnet trunk."""
    B, C, H, W = x_nchw.shape
    w1, b1, w2, b2 = params["w1"], params["b1"], params["w2"], params["b2"]
    hidden = w1.shape[1]
    desc_len = w2.shape[1]
    S = H * W

    # Channel-last layout (lane-dense in C); spatial becomes the grid axis.
    x = x_nchw.reshape(B, C, S).transpose(0, 2, 1)           # (B, S, C) glue
    if input_dtype is not None:
        x = x.astype(input_dtype)                            # e.g. bf16 in HBM
    itemsize = x.dtype.itemsize

    # Batch tile: keep the matmul M dimension full (>=128 rows when possible).
    if batch_tile is None:
        batch_tile = 128 if (B >= 128 and B % 128 == 0) else B
    tb = batch_tile
    assert B % tb == 0 and (tb == B or tb % 8 == 0), (B, tb)

    # Spatial tile: ~4 MiB per input buffer (double-buffered by the pipeline),
    # multiple of 8 sublanes.
    if spatial_tile is None:
        target_bytes = 4 * 1024 * 1024
        spatial_tile = max(8, (target_bytes // (tb * C * itemsize)) // 8 * 8)
    ts = min(_round_up(S, 8), _round_up(spatial_tile, 8))
    S_pad = _round_up(S, ts)
    if S_pad != S:
        x = jnp.pad(x, ((0, 0), (0, S_pad - S), (0, 0)))     # zeros: pool-safe

    grid = (B // tb, S_pad // ts)

    # Explicit VMEM budget (fits v5e 16 MiB scoped default and v7x 64 MiB
    # physical): double-buffered input tile + resident weights + output + acc.
    param_bytes = (w1.size + b1.size + w2.size + b2.size) * 4
    vmem_bytes = (2 * tb * ts * C * itemsize
                  + param_bytes
                  + 2 * tb * desc_len * 4
                  + tb * C * 4)
    vmem_limit = int(min(64 * 1024 * 1024,
                         max(16 * 1024 * 1024, 2 * vmem_bytes + (2 << 20))))

    cost = pl.CostEstimate(
        flops=int(2 * B * (C * hidden + hidden * desc_len) + B * S * C),
        transcendentals=int(B * (desc_len + 1)),
        bytes_accessed=int(B * S_pad * C * itemsize + param_bytes
                           + B * desc_len * 4),
    )

    kernel = functools.partial(_kpdesc_kernel, inv_hw=1.0 / float(S))

    return pl.pallas_call(
        kernel,
        out_shape=jax.ShapeDtypeStruct((B, desc_len), jnp.float32),
        grid_spec=pltpu.PrefetchScalarGridSpec(
            num_scalar_prefetch=0,
            grid=grid,
            in_specs=[
                pl.BlockSpec((tb, ts, C), lambda b, s: (b, s, 0)),
                pl.BlockSpec((C, hidden), lambda b, s: (0, 0)),   # resident
                pl.BlockSpec((1, hidden), lambda b, s: (0, 0)),   # resident
                pl.BlockSpec((hidden, desc_len), lambda b, s: (0, 0)),
                pl.BlockSpec((1, desc_len), lambda b, s: (0, 0)),
            ],
            out_specs=pl.BlockSpec((tb, desc_len), lambda b, s: (b, 0)),
            scratch_shapes=[pltpu.VMEM((tb, C), jnp.float32)],
        ),
        compiler_params=pltpu.CompilerParams(
            dimension_semantics=("parallel", "arbitrary"),
            vmem_limit_bytes=vmem_limit,
        ),
        cost_estimate=cost,
    )(x, w1, b1, w2, b2)


def init_params(key, mid_channels, hidden, desc_len):
    """Matches the PyTorch init: Linear weights ~ N(0, 0.01), biases zero.

    PyTorch Linear stores weight as (out, in) and computes x @ W.T; we store
    the transposed (in, out) layout for the kernel.
    """
    k1, k2 = jax.random.split(key)
    w1_pt = 0.01 * jax.random.normal(k1, (hidden, mid_channels), jnp.float32)
    w2_pt = 0.01 * jax.random.normal(k2, (desc_len, hidden), jnp.float32)
    return {
        "w1": jnp.transpose(w1_pt),                 # (mid_channels, hidden)
        "b1": jnp.zeros((1, hidden), jnp.float32),
        "w2": jnp.transpose(w2_pt),                 # (hidden, desc_len)
        "b2": jnp.zeros((1, desc_len), jnp.float32),
    }


def reference_forward(x_nchw, params):
    """Pure-JAX reference for correctness checking."""
    B = x_nchw.shape[0]
    pooled = jnp.mean(x_nchw.astype(jnp.float32), axis=(2, 3)).reshape(B, -1)
    y = jnp.maximum(pooled @ params["w1"] + params["b1"], 0.0)
    z = jax.nn.sigmoid(y @ params["w2"] + params["b2"])
    norm = jnp.sqrt(jnp.sum(z * z, axis=1, keepdims=True))
    return z / jnp.maximum(norm, 1e-12)


if __name__ == "__main__":
    # Small shapes: batch=2, channels=32, spatial=16x16, hidden=64, desc=32.
    B, C, H, W = 2, 32, 16, 16
    HIDDEN, DESC = 64, 32

    key = jax.random.PRNGKey(0)
    kx, kp = jax.random.split(key)
    x = jax.random.normal(kx, (B, C, H, W), jnp.float32)
    params = init_params(kp, C, HIDDEN, DESC)

    # f32 path; small spatial tile so the demo exercises the multi-step
    # reduction grid (256 spatial positions -> 4 grid steps).
    out = keypoint_descriptor_net(x, params, spatial_tile=64)
    out = jax.block_until_ready(out)
    ref = reference_forward(x, params)
    assert out.shape == (B, DESC), out.shape
    assert jnp.allclose(out, ref, atol=1e-5, rtol=1e-5), (
        float(jnp.max(jnp.abs(out - ref))))

    # bf16-in-HBM path (halves read traffic); compare against a reference that
    # sees the same bf16-rounded feature map.
    out_bf16 = keypoint_descriptor_net(x, params, spatial_tile=64,
                                       input_dtype=jnp.bfloat16)
    out_bf16 = jax.block_until_ready(out_bf16)
    ref_bf16 = reference_forward(x.astype(jnp.bfloat16), params)
    assert jnp.allclose(out_bf16, ref_bf16, atol=2e-3, rtol=2e-3), (
        float(jnp.max(jnp.abs(out_bf16 - ref_bf16))))

    print("KERNEL_OK")
</pallas_src>

<mosaic_0001>
module attributes {stable_mosaic.version = 11 : i64} {
  func.func @_kpdesc_kernel(%arg0: i32, %arg1: i32, %arg2: memref<2x64x32xf32, #tpu.memory_space<vmem>>, %arg3: memref<32x64xf32, #tpu.memory_space<vmem>>, %arg4: memref<1x64xf32, #tpu.memory_space<vmem>>, %arg5: memref<64x32xf32, #tpu.memory_space<vmem>>, %arg6: memref<1x32xf32, #tpu.memory_space<vmem>>, %arg7: memref<2x32xf32, #tpu.memory_space<vmem>>, %arg8: memref<2x32xf32, #tpu.memory_space<vmem>>) attributes {dimension_semantics = [#tpu.dimension_semantics<parallel>, #tpu.dimension_semantics<arbitrary>], iteration_bounds = array<i64: 1, 4>, scalar_prefetch = 0 : i64, scratch_operands = 1 : i64, tpu.core_type = #tpu.core_type<tc>, window_params = [{transform_indices = @transform_0, window_bounds = array<i64: 2, 64, 32>}, {pipeline_mode = #tpu.pipeline_mode<synchronous>, transform_indices = @transform_1, window_bounds = array<i64: 32, 64>}, {pipeline_mode = #tpu.pipeline_mode<synchronous>, transform_indices = @transform_2, window_bounds = array<i64: 1, 64>}, {pipeline_mode = #tpu.pipeline_mode<synchronous>, transform_indices = @transform_3, window_bounds = array<i64: 64, 32>}, {pipeline_mode = #tpu.pipeline_mode<synchronous>, transform_indices = @transform_4, window_bounds = array<i64: 1, 32>}, {transform_indices = @transform_5, window_bounds = array<i64: 2, 32>}]} {
    %c0_i32 = arith.constant 0 : i32
    %0 = arith.cmpi eq, %arg1, %c0_i32 : i32
    %1 = arith.extui %0 : i1 to i32
    %c0_i32_0 = arith.constant 0 : i32
    %2 = arith.cmpi ne, %1, %c0_i32_0 : i32
    scf.if %2 {
      %cst_8 = arith.constant 0.000000e+00 : f32
      %11 = vector.broadcast %cst_8 : f32 to vector<2x32xf32>
      %c0_9 = arith.constant 0 : index
      %c0_10 = arith.constant 0 : index
      %12 = vector.load %arg8[%c0_9, %c0_10] : memref<2x32xf32, #tpu.memory_space<vmem>>, vector<2x32xf32>
      tpu.vector_store %arg8[%c0_9, %c0_10], %11 {strides = array<i32>} : memref<2x32xf32, #tpu.memory_space<vmem>>, vector<2x32xf32>,
    } else {
    }
    %c0 = arith.constant 0 : index
    %c0_1 = arith.constant 0 : index
    %c0_2 = arith.constant 0 : index
    %3 = vector.load %arg2[%c0, %c0_1, %c0_2] : memref<2x64x32xf32, #tpu.memory_space<vmem>>, vector<2x64x32xf32>
    %c0_3 = arith.constant 0 : index
    %c0_4 = arith.constant 0 : index
    %4 = vector.load %arg8[%c0_3, %c0_4] : memref<2x32xf32, #tpu.memory_space<vmem>>, vector<2x32xf32>
    %cst = arith.constant dense<0.000000e+00> : vector<2x32xf32>
    %5 = vector.multi_reduction <add>, %3, %cst [1] : vector<2x64x32xf32> to vector<2x32xf32>
    %6 = arith.addf %4, %5 : vector<2x32xf32>
    %c0_5 = arith.constant 0 : index
    %c0_6 = arith.constant 0 : index
    %7 = vector.load %arg8[%c0_5, %c0_6] : memref<2x32xf32, #tpu.memory_space<vmem>>, vector<2x32xf32>
    tpu.vector_store %arg8[%c0_5, %c0_6], %6 {strides = array<i32>} : memref<2x32xf32, #tpu.memory_space<vmem>>, vector<2x32xf32>,
    %c3_i32 = arith.constant 3 : i32
    %8 = arith.cmpi eq, %arg1, %c3_i32 : i32
    %9 = arith.extui %8 : i1 to i32
    %c0_i32_7 = arith.constant 0 : i32
    %10 = arith.cmpi ne, %9, %c0_i32_7 : i32
    scf.if %10 {
      %c0_8 = arith.constant 0 : index
      %c0_9 = arith.constant 0 : index
      %11 = vector.load %arg8[%c0_8, %c0_9] : memref<2x32xf32, #tpu.memory_space<vmem>>, vector<2x32xf32>
      %cst_10 = arith.constant 3.906250e-03 : f32
      %12 = vector.broadcast %cst_10 : f32 to vector<2x32xf32>
      %13 = arith.mulf %11, %12 : vector<2x32xf32>
      %c0_11 = arith.constant 0 : index
      %c0_12 = arith.constant 0 : index
      %14 = vector.load %arg3[%c0_11, %c0_12] : memref<32x64xf32, #tpu.memory_space<vmem>>, vector<32x64xf32>
      %cst_13 = arith.constant dense<0.000000e+00> : vector<2x64xf32>
      %15 = tpu.matmul %13, %14, %cst_13 {dimension_numbers = #tpu.dot_dimension_numbers<[1], [0], [0], [1], [0, 0, 1, 1], [], []>} : vector<2x32xf32>, vector<32x64xf32>, vector<2x64xf32> -> vector<2x64xf32>
      %c0_14 = arith.constant 0 : index
      %c0_15 = arith.constant 0 : index
      %16 = vector.load %arg4[%c0_14, %c0_15] : memref<1x64xf32, #tpu.memory_space<vmem>>, vector<1x64xf32>
      %17 = vector.broadcast %16 : vector<1x64xf32> to vector<2x64xf32>
      %18 = arith.addf %15, %17 : vector<2x64xf32>
      %cst_16 = arith.constant 0.000000e+00 : f32
      %19 = vector.broadcast %cst_16 : f32 to vector<2x64xf32>
      %20 = arith.maximumf %18, %19 : vector<2x64xf32>
      %c0_17 = arith.constant 0 : index
      %c0_18 = arith.constant 0 : index
      %21 = vector.load %arg5[%c0_17, %c0_18] : memref<64x32xf32, #tpu.memory_space<vmem>>, vector<64x32xf32>
      %cst_19 = arith.constant dense<0.000000e+00> : vector<2x32xf32>
      %22 = tpu.matmul %20, %21, %cst_19 {dimension_numbers = #tpu.dot_dimension_numbers<[1], [0], [0], [1], [0, 0, 1, 1], [], []>} : vector<2x64xf32>, vector<64x32xf32>, vector<2x32xf32> -> vector<2x32xf32>
      %c0_20 = arith.constant 0 : index
      %c0_21 = arith.constant 0 : index
      %23 = vector.load %arg6[%c0_20, %c0_21] : memref<1x32xf32, #tpu.memory_space<vmem>>, vector<1x32xf32>
      %24 = vector.broadcast %23 : vector<1x32xf32> to vector<2x32xf32>
      %25 = arith.addf %22, %24 : vector<2x32xf32>
      %cst_22 = arith.constant 5.000000e-01 : f32
      %26 = vector.broadcast %cst_22 : f32 to vector<2x32xf32>
      %27 = arith.mulf %26, %25 : vector<2x32xf32>
      %28 = math.tanh %27 : vector<2x32xf32>
      %cst_23 = arith.constant 5.000000e-01 : f32
      %29 = vector.broadcast %cst_23 : f32 to vector<2x32xf32>
      %30 = arith.mulf %29, %28 : vector<2x32xf32>
      %cst_24 = arith.constant 5.000000e-01 : f32
      %31 = vector.broadcast %cst_24 : f32 to vector<2x32xf32>
      %32 = arith.addf %30, %31 : vector<2x32xf32>
      %33 = arith.mulf %32, %32 : vector<2x32xf32>
      %cst_25 = arith.constant dense<0.000000e+00> : vector<2xf32>
      %34 = vector.multi_reduction <add>, %33, %cst_25 [1] : vector<2x32xf32> to vector<2xf32>
      %35 = vector.shape_cast %34 : vector<2xf32> to vector<2x1xf32>
      %cst_26 = arith.constant 1.000000e-24 : f32
      %36 = vector.broadcast %cst_26 : f32 to vector<2x1xf32>
      %37 = arith.maximumf %35, %36 : vector<2x1xf32>
      %38 = math.rsqrt %37 : vector<2x1xf32>
      %39 = vector.broadcast %38 : vector<2x1xf32> to vector<2x32xf32>
      %40 = arith.mulf %32, %39 : vector<2x32xf32>
      %c0_27 = arith.constant 0 : index
      %c0_28 = arith.constant 0 : index
      %41 = vector.load %arg7[%c0_27, %c0_28] : memref<2x32xf32, #tpu.memory_space<vmem>>, vector<2x32xf32>
      tpu.vector_store %arg7[%c0_27, %c0_28], %40 {strides = array<i32>} : memref<2x32xf32, #tpu.memory_space<vmem>>, vector<2x32xf32>,
    } else {
    }
    return
  }
  func.func @transform_0(%arg0: i32, %arg1: i32) -> (i32, i32, i32) {
    %c0_i32 = arith.constant 0 : i32
    %c0_i32_0 = arith.constant 0 : i32
    return %arg0, %arg1, %c0_i32 : i32, i32, i32
  }
  func.func @transform_1(%arg0: i32, %arg1: i32) -> (i32, i32) {
    %c0_i32 = arith.constant 0 : i32
    %c0_i32_0 = arith.constant 0 : i32
    %c0_i32_1 = arith.constant 0 : i32
    return %c0_i32, %c0_i32_0 : i32, i32
  }
  func.func @transform_2(%arg0: i32, %arg1: i32) -> (i32, i32) {
    %c0_i32 = arith.constant 0 : i32
    %c0_i32_0 = arith.constant 0 : i32
    %c0_i32_1 = arith.constant 0 : i32
    return %c0_i32, %c0_i32_0 : i32, i32
  }
  func.func @transform_3(%arg0: i32, %arg1: i32) -> (i32, i32) {
    %c0_i32 = arith.constant 0 : i32
    %c0_i32_0 = arith.constant 0 : i32
    %c0_i32_1 = arith.constant 0 : i32
    return %c0_i32, %c0_i32_0 : i32, i32
  }
  func.func @transform_4(%arg0: i32, %arg1: i32) -> (i32, i32) {
    %c0_i32 = arith.constant 0 : i32
    %c0_i32_0 = arith.constant 0 : i32
    %c0_i32_1 = arith.constant 0 : i32
    return %c0_i32, %c0_i32_0 : i32, i32
  }
  func.func @transform_5(%arg0: i32, %arg1: i32) -> (i32, i32) {
    %c0_i32 = arith.constant 0 : i32
    %c0_i32_0 = arith.constant 0 : i32
    return %arg0, %c0_i32 : i32, i32
  }
}

</mosaic_0001>

<bundles_post_ra>
// kernel: tpu_custom_call.1
= control target key start
LH: loop header
LB: loop body
LE: loop exit
PB: predicated region body
PF: predicated region fallthrough
CT: control target
= control target key end

     0   :  { %10 = vsyncpa [#allocation5], 0  ;;  %s905_s18 = smov 0   ;;  %s907_s19 = smov 0   ;;  %s1095_s0 = inlined_call_operand.vmem [shape: f32[2,256,32], index: 0, kind: input, shape index: {}]   ;;  %s1096_s1 = inlined_call_operand.vmem [shape: f32[32,64], index: 1, kind: input, shape index: {}]   ;;  %s1097_s2 = inlined_call_operand.vmem [shape: f32[1,64], index: 2, kind: input, shape index: {}]   ;;  %s1098_s3 = inlined_call_operand.vmem [shape: f32[64,32], index: 3, kind: input, shape index: {}]   ;;  %s1099_s4 = inlined_call_operand.vmem [shape: f32[1,32], index: 4, kind: input, shape index: {}]   ;;  %s1100_s5 = inlined_call_operand.hbm [shape: f32[2,32], index: 5, kind: output, shape index: {}]  }
   0x1   :  { %s909_s20 = smov 0   ;;  %s911_s21 = smov 0  }
   0x2   :  { %s913_s22 = smov 0  }
   0x3 LB: > { %s664_s23 = sadd.s32 4294967295, %s868_s22   ;;  %s25_s24 = sadd.s32 1, %s864_s21  ;;  %s868_s22 = sphi %s913_s22, %s16_s22   ;;  %s864_s21 = sphi %s911_s21, %s1105_s21   ;;  %s860_s20 = sphi %s909_s20, %s1104_s20   ;;  %s856_s19 = sphi %s907_s19, %s1103_s19   ;;  %s852_s18 = sphi %s905_s18, %s1102_s18  }
   0x4   : > { %p26_p0 = scmp.ge.s32.totalorder %s25_s24, 4  ;;  %p44_p1 = scmp.ne.s32.totalorder %s856_s19, %s852_s18 }
   0x5   : > { %p45_p2 = scmp.eq.s32.totalorder %s868_s22, 0  ;;  %s37_s26 = sadd.s32 1, %s856_s19 }
   0x6   : > { %s1107_s24 = smov (%p26_p0, %s25_s24), 0  ;;  %p666_p5 = scmp.ge.s32.totalorder %s868_s22, 4 }
   0x7   : > { %p46_p3 = por %p45_p2, %p44_p1  ;;  %s33_s25 = ssub.s32 %s864_s21, %s1107_s24 }
   0x8   : > { %p35_p4 = scmp.eq.s32.totalorder %s33_s25, 0  ;;  %192 = sbr.rel (%p666_p5) target bundleno = 27 (0x1b), region = 32 }
   0xa   : > { %s941_s27 = scalar_select %p35_p4, %s856_s19, %s37_s26  }
   0xf   : > { %195 = sbr.rel (!%p46_p3) target bundleno = 27 (0x1b), region = 36  ;;  %s197_s28 = sand.u32 (%p46_p3), 1, %s856_s19  }
  0x10   : > { %s682_s29 = sshll.u32 (%p46_p3), %s864_s21, 6  ;;  %s667_s30 = sshll.u32 (%p46_p3), %s197_s28, 7 }
  0x11   : > { %s949_s8 = scalar_lea.vmem (%p46_p3), %s1095_s0, %s682_s29  ;;  %s199_s9 = scalar_lea.vmem (%p46_p3), [#allocation3], %s667_s30 }
  0x12   : > { %v263_v0 = vld [vmem:[%s949_s8] sm:$0xff] (%p46_p3)  ;;  %v265_v1 = vld [vmem:[%s949_s8 + $0x8] sm:$0xff] (%p46_p3)  ;;  %v267_v2 = vld [vmem:[%s949_s8 + $0x10] sm:$0xff] (%p46_p3) }
  0x13   : > { %264 = vst [vmem:[%s199_s9] sm:$0xff] (%p46_p3), %v263_v0  ;;  %266 = vst [vmem:[%s199_s9 + $0x8] sm:$0xff] (%p46_p3), %v265_v1  ;;  %v269_v3 = vld [vmem:[%s949_s8 + $0x18] sm:$0xff] (%p46_p3)  ;;  %v271_v4 = vld [vmem:[%s949_s8 + $0x20] sm:$0xff] (%p46_p3) }
  0x14   : > { %268 = vst [vmem:[%s199_s9 + $0x10] sm:$0xff] (%p46_p3), %v267_v2  ;;  %v273_v5 = vld [vmem:[%s949_s8 + $0x28] sm:$0xff] (%p46_p3)  ;;  %270 = vst [vmem:[%s199_s9 + $0x18] sm:$0xff] (%p46_p3), %v269_v3  ;;  %v275_v6 = vld [vmem:[%s949_s8 + $0x30] sm:$0xff] (%p46_p3) }
  0x15   : > { %272 = vst [vmem:[%s199_s9 + $0x20] sm:$0xff] (%p46_p3), %v271_v4  ;;  %274 = vst [vmem:[%s199_s9 + $0x28] sm:$0xff] (%p46_p3), %v273_v5  ;;  %v277_v7 = vld [vmem:[%s949_s8 + $0x38] sm:$0xff] (%p46_p3)  ;;  %v279_v8 = vld [vmem:[%s949_s8 + $0x100] sm:$0xff] (%p46_p3) }
  0x16   : > { %276 = vst [vmem:[%s199_s9 + $0x30] sm:$0xff] %v275_v6  ;;  %278 = vst [vmem:[%s199_s9 + $0x38] sm:$0xff] %v277_v7  ;;  %v281_v9 = vld [vmem:[%s949_s8 + $0x108] sm:$0xff]  ;;  %v283_v10 = vld [vmem:[%s949_s8 + $0x110] sm:$0xff] }
  0x17   : > { %280 = vst [vmem:[%s199_s9 + $0x40] sm:$0xff] %v279_v8  ;;  %v285_v11 = vld [vmem:[%s949_s8 + $0x118] sm:$0xff]  ;;  %282 = vst [vmem:[%s199_s9 + $0x48] sm:$0xff] %v281_v9  ;;  %v287_v12 = vld [vmem:[%s949_s8 + $0x120] sm:$0xff] }
  0x18   : > { %284 = vst [vmem:[%s199_s9 + $0x50] sm:$0xff] %v283_v10  ;;  %286 = vst [vmem:[%s199_s9 + $0x58] sm:$0xff] %v285_v11  ;;  %v289_v13 = vld [vmem:[%s949_s8 + $0x128] sm:$0xff]  ;;  %v291_v14 = vld [vmem:[%s949_s8 + $0x130] sm:$0xff] }
  0x19   : > { %288 = vst [vmem:[%s199_s9 + $0x60] sm:$0xff] %v287_v12  ;;  %290 = vst [vmem:[%s199_s9 + $0x68] sm:$0xff] %v289_v13  ;;  %v293_v15 = vld [vmem:[%s949_s8 + $0x138] sm:$0xff] }
  0x1a   : > { %292 = vst [vmem:[%s199_s9 + $0x70] sm:$0xff] %v291_v14  ;;  %294 = vst [vmem:[%s199_s9 + $0x78] sm:$0xff] %v293_v15 }
  0x1b PF: > { %p670_p6 = scmp.ge.s32.totalorder %s868_s22, 1  ;;  %p299_p7 = scmp.lt.s32.totalorder %s868_s22, 5 }
  0x1d   : > { %p300_p8 = pnand %p670_p6, %p299_p7 }
  0x1e   : > { %s306_s10 = sand.u32 (!%p300_p8), 1, %s852_s18   ;;  %p672_p9 = scmp.ne.s32.totalorder (!%p300_p8), %s860_s20, 0 }
  0x1f   : > { %303 = sbr.rel (%p300_p8) target bundleno = 721 (0x2d1), region = 74  ;;  %s671_s11 = sshll.u32 (!%p300_p8), %s306_s10, 7 }
  0x20   : > { %s970_s12 = scalar_lea.vmem (!%p300_p8), [#allocation3], %s671_s11 }
  0x26   : > { %333 = sbr.rel (%p672_p9) target bundleno = 45 (0x2d), region = 82  ;;  %vm334_vm0 = vcmask (!%p672_p9), 254976   ;;  %v870_v16 = vmov (!%p672_p9), 0.0  }
  0x27   : > { %335 = vst.msk [vmem:[#allocation2] sm:$0x3] (!%p672_p9), %vm334_vm0, %v870_v16 }
  0x2d PF: > { %v336_v17 = vld [vmem:[%s970_s12] sm:$0xff]  ;;  %v337_v18 = vld [vmem:[%s970_s12 + $0x8] sm:$0xff]  ;;  %v338_v19 = vld [vmem:[%s970_s12 + $0x10] sm:$0xff]  ;;  %vm353_vm1 = vcmask 261120   ;;  %vm398_vm2 = vcmask 1041409   ;;  %vm402_vm3 = vcmask 254976  }
  0x2e   : > { %v339_v20 = vld [vmem:[%s970_s12 + $0x18] sm:$0xff]  ;;  %v354_v21 = vsel %vm353_vm1, %v336_v17, 0.0  ;;  %v355_v22 = vsel %vm353_vm1, %v337_v18, 0.0  ;;  %v357_v23 = vsel %vm353_vm1, %v338_v19, 0.0  ;;  %v340_v24 = vld [vmem:[%s970_s12 + $0x20] sm:$0xff]  ;;  %v345_v27 = vld [vmem:[%s970_s12 + $0x48] sm:$0xff] }
  0x2f   : > { %v344_v25 = vld [vmem:[%s970_s12 + $0x40] sm:$0xff]  ;;  %v356_v26 = vadd.f32 %v355_v22, %v354_v21  ;;  %v346_v28 = vld [vmem:[%s970_s12 + $0x50] sm:$0xff]  ;;  %v347_v29 = vld [vmem:[%s970_s12 + $0x58] sm:$0xff]  ;;  %v359_v30 = vsel %vm353_vm1, %v339_v20, 0.0  ;;  %v376_v34 = vsel %vm353_vm1, %v345_v27, 0.0  ;;  %v361_v37 = vsel %vm353_vm1, %v340_v24, 0.0 }
  0x30   : > { %v375_v31 = vsel %vm353_vm1, %v344_v25, 0.0  ;;  %v341_v32 = vld [vmem:[%s970_s12 + $0x28] sm:$0xff]  ;;  %v378_v35 = vsel %vm353_vm1, %v346_v28, 0.0  ;;  %v348_v36 = vld [vmem:[%s970_s12 + $0x60] sm:$0xff]  ;;  %v342_v39 = vld [vmem:[%s970_s12 + $0x30] sm:$0xff]  ;;  %v380_v41 = vsel %vm353_vm1, %v347_v29, 0.0 }
  0x31   : > { %v358_v33 = vadd.f32 %v357_v23, %v356_v26  ;;  %v377_v38 = vadd.f32 %v376_v34, %v375_v31  ;;  %v349_v42 = vld [vmem:[%s970_s12 + $0x68] sm:$0xff]  ;;  %v363_v43 = vsel %vm353_vm1, %v341_v32, 0.0  ;;  %v343_v45 = vld [vmem:[%s970_s12 + $0x38] sm:$0xff]  ;;  %v382_v47 = vsel %vm353_vm1, %v348_v36, 0.0  ;;  %v350_v48 = vld [vmem:[%s970_s12 + $0x70] sm:$0xff]  ;;  %p673_p10 = scmp.ne.s32.totalorder %s860_s20, 3 }
  0x32   : > { %v365_v49 = vsel %vm353_vm1, %v342_v39, 0.0  ;;  %v384_v52 = vsel %vm353_vm1, %v349_v42, 0.0  ;;  %v351_v53 = vld [vmem:[%s970_s12 + $0x78] sm:$0xff]  ;;  %v367_v54 = vsel %vm353_vm1, %v343_v45, 0.0  ;;  %v386_v57 = vsel %vm353_vm1, %v350_v48, 0.0  ;;  %v411_v15 = vld [vmem:[%s1096_s1 + $0x8] sm:$0xff] (!%p673_p10) }
  0x33   : > { %v360_v40 = vadd.f32 %v359_v30, %v358_v33  ;;  %v379_v44 = vadd.f32 %v378_v35, %v377_v38  ;;  %v388_v60 = vsel %vm353_vm1, %v351_v53, 0.0  ;;  %v352_v10 = vld [vmem:[#allocation2] sm:$0x3]  ;;  %v412_v16 = vld [vmem:[%s1096_s1 + $0x10] sm:$0xff] (!%p673_p10)  ;;  %v871_v17 = vmov (!%p673_p10), 0.0|0.0   ;;  %v413_v19 = vld [vmem:[%s1096_s1 + $0x18] sm:$0xff] (!%p673_p10) }
  0x34   : > { %v410_v14 = vld [vmem:[%s1096_s1] sm:$0xff] (!%p673_p10)  ;;  %727 = vmatprep.subr.bf16.mxu0 (!%p673_p10), %v871_v17  ;;  %vm872_vm4 = vmmov (!%p673_p10), 0   ;;  %v873_v20 = vmov (!%p673_p10), 0.0   ;;  %733 = vmatprep.subr.bf16.mxu1 (!%p673_p10), %v871_v17  ;;  %v496_v22 = vld [vmem:[%s1098_s3 + $0x8] sm:$0xff] (!%p673_p10)  ;;  %v497_v23 = vld [vmem:[%s1098_s3 + $0x10] sm:$0xff] (!%p673_p10)  ;;  %v731_v25 = vpack.c.bf16 (!%p673_p10), %v413_v19, %v412_v16  ;;  %vm510_vm5 = vcmask (!%p673_p10), 523264  }
  0x35   : > { %v362_v46 = vadd.f32 %v361_v37, %v360_v40  ;;  %v381_v50 = vadd.f32 %v380_v41, %v379_v44  ;;  %v728_v18 = vpack.c.bf16 (!%p673_p10), %v411_v15, %v410_v14  ;;  %705 = vmatprep.mubr.msk.f32.mxu0 (!%p673_p10), %vm872_vm4, %v873_v20  ;;  %v495_v21 = vld [vmem:[%s1098_s3] sm:$0xff] (!%p673_p10)  ;;  %v498_v24 = vld [vmem:[%s1098_s3 + $0x18] sm:$0xff] (!%p673_p10)  ;;  %724 = vmatprep.mubr.msk.f32.mxu1 (!%p673_p10), %vm872_vm4, %v873_v20  ;;  %v500_v31 = vld [vmem:[%s1098_s3 + $0x28] sm:$0xff] (!%p673_p10) }
  0x36   : > { %v734_v27 = vpack.c.bf16 (!%p673_p10), %v496_v22, %v495_v21  ;;  %v737_v28 = vpack.c.bf16 (!%p673_p10), %v498_v24, %v497_v23  ;;  %v499_v30 = vld [vmem:[%s1098_s3 + $0x20] sm:$0xff] (!%p673_p10)  ;;  %v501_v33 = vld [vmem:[%s1098_s3 + $0x30] sm:$0xff] (!%p673_p10)  ;;  %v502_v34 = vld [vmem:[%s1098_s3 + $0x38] sm:$0xff] (!%p673_p10) }
  0x37   : > { %v364_v51 = vadd.f32 %v363_v43, %v362_v46  ;;  %v383_v55 = vadd.f32 %v382_v47, %v381_v50  ;;  %729 = vmatpush3.bf16.msra.mxu0 (!%p673_p10), %v728_v18  ;;  %v740_v32 = vpack.c.bf16 (!%p673_p10), %v500_v31, %v499_v30  ;;  %v743_v35 = vpack.c.bf16 (!%p673_p10), %v502_v34, %v501_v33  ;;  %v674_v36 = vld [vmem:[%s1097_s2] ss:$0 sm:$0xff] (!%p673_p10) }
  0x38   : > { %730 = vmatprep.subr.bf16.mxu0 (!%p673_p10), %v871_v17  ;;  %735 = vmatpush3.bf16.msra.mxu1 (!%p673_p10), %v734_v27  ;;  %v676_v41 = vld [vmem:[%s1099_s4] ss:$0 sm:$0xff] (!%p673_p10) }
  0x39   : > { %v366_v56 = vadd.f32 %v365_v49, %v364_v51  ;;  %v385_v58 = vadd.f32 %v384_v52, %v383_v55  ;;  %736 = vmatprep.subr.bf16.mxu1 (!%p673_p10), %v871_v17 }
  0x3b   : > { %v368_v59 = vadd.f32 %v367_v54, %v366_v56  ;;  %v387_v61 = vadd.f32 %v386_v57, %v385_v58  ;;  %732 = vmatpush3.bf16.msra.mxu0 (!%p673_p10), %v731_v25 }
  0x3c   : > { %738 = vmatpush3.bf16.msra.mxu1 (!%p673_p10), %v737_v28 }
  0x3d   : > { %v369_v62 = vrot.slane %v368_v59, 4  ;;  %v389_v63 = vadd.f32 %v388_v60, %v387_v61  ;;  %739 = vmatprep.subr.bf16.mxu1 (!%p673_p10), %v871_v17 }
  0x3f   : > { %v370_v0 = vadd.f32 %v369_v62, %v368_v59  ;;  %v390_v1 = vrot.slane %v389_v63, 4 }
  0x40   : > { %741 = vmatpush3.bf16.msra.mxu1 (!%p673_p10), %v740_v32 }
  0x41   : > { %v371_v2 = vrot.slane %v370_v0, 2  ;;  %v391_v3 = vadd.f32 %v390_v1, %v389_v63  ;;  %742 = vmatprep.subr.bf16.mxu1 (!%p673_p10), %v871_v17 }
  0x43   : > { %v372_v4 = vadd.f32 %v371_v2, %v370_v0  ;;  %v392_v5 = vrot.slane %v391_v3, 2 }
  0x44   : > { %744 = vmatpush3.bf16.msra.mxu1 (!%p673_p10), %v743_v35 }
  0x45   : > { %v373_v6 = vrot.slane %v372_v4, 1  ;;  %v393_v7 = vadd.f32 %v392_v5, %v391_v3 }
  0x47   : > { %v374_v8 = vadd.f32 %v373_v6, %v372_v4  ;;  %v394_v9 = vrot.slane %v393_v7, 1 }
  0x48   : > { %407 = sbr.rel (%p673_p10) target bundleno = 696 (0x2b8), region = 86 }
  0x49   : > { %v395_v11 = vadd.f32 %v394_v9, %v393_v7 }
  0x4b   : > { %v399_v12 = vsel %vm398_vm2, %v395_v11, %v374_v8 }
  0x4c   : > { %v401_v13 = vadd.f32 %v399_v12, %v352_v10 }
  0x4e   : > { %403 = vst.msk [vmem:[#allocation2] sm:$0x3] %vm402_vm3, %v401_v13 }
  0x55   : > { %v408_v26 = vld [vmem:[#allocation2] sm:$0x3] }
  0x56   : > { %v409_v29 = vmul.f32 0.00390625, %v408_v26 }
  0x58   : > { %706 = vmatmul.mubr.msk.f32.vlgmr.msra.gmra.mrb[0].mxu0 %vm353_vm1, %v409_v29 }
 0x12b   : > { %v490_v37 = vpop.f32.mrb[0].mxu0 }
 0x12c   : > { %v491_v38 = vadd.f32 %v674_v36, %v490_v37  ;;  %v707_v39 = vpop.f32.mrb[1].mxu0 }
 0x12e   : > { %v494_v40 = vmax.f32 %v491_v38, 0.0 }
 0x130   : > { %725 = vmatmul.mubr.msk.f32.vlgmr.msra.gmra.mrb[0].mxu1 %vm510_vm5, %v494_v40 }
 0x203   : > { %v580_v42 = vpop.f32.mrb[0].mxu1 }
 0x204   : > { %v581_v43 = vadd.f32 %v676_v41, %v580_v42  ;;  %v726_v44 = vpop.f32.mrb[1].mxu1 }
 0x206   : > { %v584_v45 = vmul.f32 0.5, %v581_v43 }
 0x208   : > { %796 = vtanh.f32 %v584_v45 }
 0x212   : > { %v797_v46 = vpop.eup %796 }
 0x213   : > { %v586_v47 = vmul.f32 0.5, %v797_v46 }
 0x215   : > { %v587_v48 = vadd.f32 0.5, %v586_v47 }
 0x217   : > { %v588_v49 = vmul.f32 %v587_v48, %v587_v48 }
 0x219   : > { %v589_v50 = vsel %vm402_vm3, %v588_v49, 0.0 }
 0x21a   : > { %590 = vadd.xlane.f32.xlu0 %v589_v50 }
 0x2a7   : > { %v591_v51 = vpop.xlane.xlu0 %590 }
 0x2a8   : > { %v592_v52 = vmax.f32 %v591_v51, 1e-24 }
 0x2aa   : > { %798 = vrsqrt.f32 %v592_v52 }
 0x2b4   : > { %v799_v53 = vpop.eup %798 }
 0x2b5   : > { %v594_v54 = vmul.f32 %v799_v53, %v587_v48 }
 0x2b7   : > { %595 = vst.msk [vmem:[#allocation4] sm:$0x3] %vm402_vm3, %v594_v54 }
 0x2b8 PF: > { %p1054_p11 = scmp.eq.s32.totalorder %s664_s23, 3  ;;  %s874_s29 = smov [#allocation4]  }
 0x2b9   : > { %s605_s30 = sshll.u32 %s874_s29, 4  ;;  %s606_s30 = int_to_ptr.vmem [resolvable:$true] %s605_s30 }
 0x2ba   : > { %s800_s6 = scalar_lea.vmem %s606_s30, 32  ;;  %p807_p1 = scmp.lt.s32.totalorder %s606_s30, %s606_s30 }
 0x2bb   : > { %p801_p12 = scmp.ne.s32.totalorder %s606_s30, %s800_s6  ;;  %p808_p2 = scmp.lt.s32.totalorder %s800_s6, %s800_s6 }
 0x2bd   : > { %p802_p13 = pnand %p801_p12, %p1054_p11  ;;  %p809_p3 = por %p808_p2, %p807_p1 }
 0x2bf   : > { %p803_p0 = pneg %p802_p13 }
 0x2c1   : > { %p810_p4 = pnand %p809_p3, %p803_p0 }
 0x2c3   : > { %813 = shalt.err (!%p810_p4)
}
 0x2c4   : > { %s814_s23 = scalar_lea.hbm %s1100_s5, 32 }
 0x2c5   : > { %p815_p5 = scmp.ne.s32.totalorder %s1100_s5, %s814_s23  ;;  %p820_p8 = scmp.lt.u32.totalorder %s814_s23, %s1100_s5 }
 0x2c7   : > { %p816_p6 = pnand %p815_p5, %p1054_p11 }
 0x2c9   : > { %p817_p7 = pneg %p816_p6 }
 0x2cb   : > { %p822_p9 = pnand %p820_p8, %p817_p7 }
 0x2cd   : > { %825 = shalt.err (!%p822_p9)
}
 0x2ce   : > { %746 = dma.vmem_to_hbm [thread:$0]  (%p1054_p11), %s606_s30, 32, %s1100_s5, [#allocation5]  }
 0x2cf   : > { %847 = dma.done.wait (%p1054_p11), [#allocation5], 32  }
 0x2d0   : > { %849 = vsyncadd (%p1054_p11), [#allocation5], 4294967264 }
 0x2d1 PF: > { %s16_s22 = sadd.s32 1, %s868_s22   ;;  %s1102_s18 = smov %s856_s19 }
 0x2d2   : > { %p13_p10 = scmp.ge.s32.totalorder %s16_s22, 6   ;;  %s1103_s19 = smov %s941_s27 }
 0x2d3   : > { %s1104_s20 = smov %s864_s21  ;;  %s1105_s21 = smov %s1107_s24 }
 0x2d4   :  { %15 = sbr.rel (!%p13_p10) target bundleno = 3 (0x3), region = 119 }
 0x2db   :  { %618 = vsyncpa [#allocation5], 1 }
 0x2dc   :  { %620 = vsyncpa [#allocation5 + $0x1], 1 }

</bundles_post_ra>
